<compile_context>
chip_gen: v7x
topology: tpu7x:2x2x1
jax: 0.10.0
libtpu: 0.0.40
codegen_flags: <defaults>
</compile_context>

<pallas_src>
import jax
import jax.numpy as jnp
from jax.experimental import pallas as pl
from jax.experimental.pallas import tpu as pltpu

_LANE = 128
_SUBLANE = 8
_SPLIT_BYTES = 2 * 1024 * 1024          # split a single block into 2 above this
_DEFAULT_BLOCK_BYTES = 4 * 1024 * 1024  # ~4 MiB per block (per input / per output)


def _round_up(x, m):
    return (x + m - 1) // m * m


def _laplace_density_kernel(coef_ref, sdf_ref, out_ref):
    # coef_ref (SMEM, f32[3]): [half_alpha, neg_inv_beta, alpha]
    half_alpha = coef_ref[0]
    neg_inv_beta = coef_ref[1]
    alpha = coef_ref[2]
    # Load in the array's native dtype, compute in f32 (safe on v5e/v6e/v7x).
    x = sdf_ref[...].astype(jnp.float32)
    e = jnp.exp(jnp.abs(x) * neg_inv_beta)          # EUP; exp form avoids sign()
    pos = half_alpha * e                            # x >= 0 branch (also x == 0)
    dens = jnp.where(x >= 0, pos, alpha - pos)      # x <  0 branch
    out_ref[...] = dens.astype(out_ref.dtype)


def laplace_density(sdf, beta_param, beta_min_param, beta=None, *,
                    block_bytes=_DEFAULT_BLOCK_BYTES):
    """Pallas version of LaplaceDensity.forward.

    `sdf` may be any shape / float dtype.  Lane-aligned sizes (N % 128 == 0)
    are viewed as a zero-copy (rows, 128) slab; other sizes run on the flat
    1-D view (no padded copies).  Output matches input shape and dtype.
    """
    orig_shape = sdf.shape
    dtype = sdf.dtype

    # get_beta() glue (scalar math) in plain JAX; precompute kernel coefficients.
    if beta is None:
        beta = jnp.abs(jnp.asarray(beta_param, jnp.float32)) + \
            jnp.asarray(beta_min_param, jnp.float32)
    beta = jnp.asarray(beta, jnp.float32).reshape(())
    alpha = 1.0 / beta
    coefs = jnp.stack([0.5 * alpha, -alpha, alpha]).astype(jnp.float32)  # SMEM (3,)

    flat = sdf.reshape(-1)
    n = flat.shape[0]
    if n == 0:
        return sdf

    itemsize = jnp.dtype(dtype).itemsize
    smem_spec = pl.BlockSpec(memory_space=pltpu.MemorySpace.SMEM)
    compiler_params = pltpu.CompilerParams(
        dimension_semantics=("parallel",),
        vmem_limit_bytes=32 * 1024 * 1024,
    )

    if n % _LANE == 0:
        # ---- lane-aligned: zero-copy 2-D (rows, 128) view --------------------
        rows = n // _LANE
        x2d = flat.reshape(rows, _LANE)
        tr_max = max(_SUBLANE,
                     ((block_bytes // (_LANE * itemsize)) // _SUBLANE) * _SUBLANE)
        if rows > tr_max:
            tr = tr_max                                   # big input: ~4 MiB blocks
        elif rows * _LANE * itemsize >= _SPLIT_BYTES and rows >= 2 * _SUBLANE:
            # Mid-size input: 2 blocks of >= 1 MiB each so a v7x megacore can
            # shard the "parallel" axis; negligible cost on 1-TC chips.
            tr = _round_up((rows + 1) // 2, _SUBLANE)
        else:
            tr = rows                                     # single full-extent block
        grid = (pl.cdiv(rows, tr),)                       # ragged last block masked

        out2d = pl.pallas_call(
            _laplace_density_kernel,
            out_shape=jax.ShapeDtypeStruct((rows, _LANE), dtype),
            grid=grid,
            in_specs=[smem_spec,
                      pl.BlockSpec((tr, _LANE), lambda i: (i, 0))],
            out_specs=pl.BlockSpec((tr, _LANE), lambda i: (i, 0)),
            compiler_params=compiler_params,
        )(coefs, x2d)
        return out2d.reshape(orig_shape)

    # ---- lane-unaligned: run on the flat 1-D view (no pad / slice copies) ----
    blk_cap = max(_SUBLANE * _LANE,
                  ((block_bytes // itemsize) // (_SUBLANE * _LANE)) * (_SUBLANE * _LANE))
    if n <= blk_cap:
        blk = n                      # full-extent block: always legal, no masking
        grid = (1,)
    else:
        blk = blk_cap                # multiple of 8*128; ragged final block masked
        grid = (pl.cdiv(n, blk),)

    out1d = pl.pallas_call(
        _laplace_density_kernel,
        out_shape=jax.ShapeDtypeStruct((n,), dtype),
        grid=grid,
        in_specs=[smem_spec,
                  pl.BlockSpec((blk,), lambda i: (i,))],
        out_specs=pl.BlockSpec((blk,), lambda i: (i,)),
        compiler_params=compiler_params,
    )(coefs, flat)
    return out1d.reshape(orig_shape)


class LaplaceDensityPallas:
    """Mirror of the PyTorch module; parameters held as plain arrays."""

    def __init__(self, init_val, beta_min=0.0001):
        self.beta_min = jnp.full((1,), beta_min, dtype=jnp.float32)
        self.beta = jnp.full((1,), init_val, dtype=jnp.float32)

    def get_beta(self):
        return jnp.abs(self.beta) + self.beta_min

    def __call__(self, sdf, beta=None):
        return laplace_density(sdf, self.beta, self.beta_min, beta=beta)


def _reference(sdf, beta_param, beta_min_param, beta=None):
    if beta is None:
        beta = jnp.abs(beta_param) + beta_min_param
    beta = jnp.asarray(beta, jnp.float32).reshape(())
    alpha = 1.0 / beta
    x = sdf.astype(jnp.float32)
    return alpha * (0.5 + 0.5 * jnp.sign(x) * jnp.expm1(-jnp.abs(x) / beta))


if __name__ == "__main__":
    key = jax.random.PRNGKey(0)
    # Typical SDF query batch: (num_rays_batch, ..., samples) SDF values.
    sdf = jax.random.normal(key, (2, 4, 16, 16), dtype=jnp.float32) * 0.3

    model = LaplaceDensityPallas(init_val=0.1, beta_min=0.0001)

    # 1) Main path (learnable beta), f32 in / f32 out, lane-aligned.
    out = jax.block_until_ready(model(sdf))
    ref = _reference(sdf, model.beta, model.beta_min)
    assert out.shape == sdf.shape and out.dtype == sdf.dtype
    assert jnp.allclose(out, ref, atol=1e-5, rtol=1e-5), "mismatch vs reference"

    # 2) Explicit-beta branch.
    out2 = jax.block_until_ready(
        laplace_density(sdf, model.beta, model.beta_min, beta=jnp.float32(0.05)))
    ref2 = _reference(sdf, model.beta, model.beta_min, beta=jnp.float32(0.05))
    assert jnp.allclose(out2, ref2, atol=1e-5, rtol=1e-5), "mismatch (explicit beta)"

    # 3) bf16 input: in-kernel cast path, bf16 output.
    sdf_bf16 = sdf.astype(jnp.bfloat16)
    out3 = jax.block_until_ready(model(sdf_bf16))
    assert out3.dtype == jnp.bfloat16 and out3.shape == sdf.shape
    ref3 = _reference(sdf_bf16, model.beta, model.beta_min)
    assert jnp.allclose(out3.astype(jnp.float32), ref3, atol=5e-2, rtol=2e-2), \
        "mismatch vs reference (bf16)"

    # 4) Lane-unaligned size (105 elems, incl. an exact zero): 1-D view path,
    #    no pad / slice copies.
    sdf_odd = jax.random.normal(jax.random.PRNGKey(1), (3, 5, 7), dtype=jnp.float32) * 0.2
    sdf_odd = sdf_odd.at[0, 0, 0].set(0.0)
    out4 = jax.block_until_ready(model(sdf_odd))
    ref4 = _reference(sdf_odd, model.beta, model.beta_min)
    assert out4.shape == sdf_odd.shape
    assert jnp.allclose(out4, ref4, atol=1e-5, rtol=1e-5), "mismatch (odd shape)"

    # 5) Multi-block 2-D path with a masked ragged final row-block
    #    (520 rows, 256-row blocks -> grid=3), via a small block override.
    sdf_big = jax.random.normal(jax.random.PRNGKey(2), (520, 128), dtype=jnp.float32) * 0.5
    out5 = jax.block_until_ready(
        laplace_density(sdf_big, model.beta, model.beta_min, block_bytes=128 * 1024))
    ref5 = _reference(sdf_big, model.beta, model.beta_min)
    assert jnp.allclose(out5, ref5, atol=1e-5, rtol=1e-5), "mismatch (multi-block)"

    print("KERNEL_OK")
</pallas_src>

<mosaic_0001>
module attributes {stable_mosaic.version = 11 : i64} {
  func.func @_laplace_density_kernel(%arg0: i32, %arg1: memref<3xf32, #tpu.memory_space<smem>>, %arg2: memref<16x128xf32, #tpu.memory_space<vmem>>, %arg3: memref<16x128xf32, #tpu.memory_space<vmem>>) attributes {dimension_semantics = [#tpu.dimension_semantics<parallel>], iteration_bounds = array<i64: 1>, scalar_prefetch = 0 : i64, scratch_operands = 0 : i64, tpu.core_type = #tpu.core_type<tc>, window_params = [{transform_indices = @transform_0, window_bounds = array<i64: 3>}, {transform_indices = @transform_1, window_bounds = array<i64: 16, 128>}, {transform_indices = @transform_2, window_bounds = array<i64: 16, 128>}]} {
    %c0 = arith.constant 0 : index
    %0 = memref.load %arg1[%c0] : memref<3xf32, #tpu.memory_space<smem>>
    %c1 = arith.constant 1 : index
    %1 = memref.load %arg1[%c1] : memref<3xf32, #tpu.memory_space<smem>>
    %c2 = arith.constant 2 : index
    %2 = memref.load %arg1[%c2] : memref<3xf32, #tpu.memory_space<smem>>
    %c0_0 = arith.constant 0 : index
    %c0_1 = arith.constant 0 : index
    %3 = vector.load %arg2[%c0_0, %c0_1] : memref<16x128xf32, #tpu.memory_space<vmem>>, vector<16x128xf32>
    %4 = math.absf %3 : vector<16x128xf32>
    %5 = vector.broadcast %1 : f32 to vector<16x128xf32>
    %6 = arith.mulf %4, %5 : vector<16x128xf32>
    %7 = math.exp %6 : vector<16x128xf32>
    %8 = vector.broadcast %0 : f32 to vector<16x128xf32>
    %9 = arith.mulf %8, %7 : vector<16x128xf32>
    %cst = arith.constant 0.000000e+00 : f32
    %10 = vector.broadcast %cst : f32 to vector<16x128xf32>
    %11 = arith.cmpf oge, %3, %10 : vector<16x128xf32>
    %12 = vector.broadcast %2 : f32 to vector<16x128xf32>
    %13 = arith.subf %12, %9 : vector<16x128xf32>
    %14 = arith.select %11, %9, %13 : vector<16x128xi1>, vector<16x128xf32>
    %c0_2 = arith.constant 0 : index
    %c0_3 = arith.constant 0 : index
    %15 = vector.load %arg3[%c0_2, %c0_3] : memref<16x128xf32, #tpu.memory_space<vmem>>, vector<16x128xf32>
    tpu.vector_store %arg3[%c0_2, %c0_3], %14 {strides = array<i32>} : memref<16x128xf32, #tpu.memory_space<vmem>>, vector<16x128xf32>,
    return
  }
  func.func @transform_0(%arg0: i32) -> i32 {
    %c0_i32 = arith.constant 0 : i32
    %c0_i32_0 = arith.constant 0 : i32
    return %c0_i32 : i32
  }
  func.func @transform_1(%arg0: i32) -> (i32, i32) {
    %c0_i32 = arith.constant 0 : i32
    %c0_i32_0 = arith.constant 0 : i32
    return %arg0, %c0_i32 : i32, i32
  }
  func.func @transform_2(%arg0: i32) -> (i32, i32) {
    %c0_i32 = arith.constant 0 : i32
    %c0_i32_0 = arith.constant 0 : i32
    return %arg0, %c0_i32 : i32, i32
  }
}

</mosaic_0001>

<bundles_post_ra>
// kernel: tpu_custom_call.1
= control target key start
LH: loop header
LB: loop body
LE: loop exit
PB: predicated region body
PF: predicated region fallthrough
CT: control target
= control target key end

     0   :  { %7 = vsyncpa [#allocation5], 0  ;;  %s214_s0 = inlined_call_operand.hbm [shape: f32[3], index: 0, kind: input, shape index: {}]   ;;  %s215_s1 = inlined_call_operand.hbm [shape: f32[16,128], index: 1, kind: input, shape index: {}]   ;;  %s216_s2 = inlined_call_operand.hbm [shape: f32[16,128], index: 2, kind: output, shape index: {}]  }
   0x1   :  { %8 = vsyncpa [#allocation3], 0 }
   0x2   :  { %9 = vsyncpa [#allocation4], 0  ;;  %s92_s11 = scalar_lea.hbm %s214_s0, 16 }
   0x3   :  { %p93_p0 = scmp.ne.s32.totalorder %s214_s0, %s92_s11  ;;  %p96_p1 = scmp.lt.u32.totalorder %s92_s11, %s214_s0 }
   0x5   :  { %p98_p2 = pnand %p96_p1, %p93_p0 }
   0x7   :  { %101 = shalt.err (!%p98_p2)
}
   0x8   :  { %s152_s16 = smov [#allocation2]   ;;  %s153_s19 = smov [#allocation6]  }
   0x9   :  { %17 = dma.hbm_to_smem %s214_s0, 16, %s152_s16, [#allocation5]  }
   0xa   :  { %s23_s20 = sshll.u32 %s153_s19, 4  ;;  %s102_s23 = scalar_lea.hbm %s215_s1, 256  ;;  %s24_s20 = int_to_ptr.vmem [resolvable:$true] %s23_s20 }
   0xb   :  { %p103_p3 = scmp.ne.s32.totalorder %s215_s1, %s102_s23  ;;  %p106_p4 = scmp.lt.u32.totalorder %s102_s23, %s215_s1 }
   0xd   :  { %p108_p5 = pnand %p106_p4, %p103_p3 }
   0xf   :  { %111 = shalt.err (!%p108_p5)
}
  0x10   :  { %s112_s28 = scalar_lea.vmem %s24_s20, 256  ;;  %p117_p7 = scmp.lt.s32.totalorder %s24_s20, %s24_s20 }
  0x11   :  { %p113_p6 = scmp.ne.s32.totalorder %s24_s20, %s112_s28  ;;  %p118_p8 = scmp.lt.s32.totalorder %s112_s28, %s112_s28 }
  0x13   :  { %p119_p9 = por %p118_p8, %p117_p7 }
  0x15   :  { %p120_p10 = pnand %p119_p9, %p113_p6 }
  0x17   :  { %123 = shalt.err (!%p120_p10)
}
  0x18   :  { %s154_s0 = smov 128   ;;  %s155_s29 = smov 8  }
  0x19   :  { %29 = dma.hbm_to_vmem [thread:$0]  %s215_s1, 256, %s24_s20, [#allocation3], %s154_s0, %s154_s0, %s155_s29  }
  0x1a   :  { %146 = dma.done.wait [#allocation5], 16  }
  0x1b   :  { %147 = vsyncadd [#allocation5], 4294967280 }
  0x1c   :  { %148 = dma.done.wait [#allocation3], 256  }
  0x1d   :  { %149 = vsyncadd [#allocation3], 4294967040 }
  0x1e   :  { %36 = sfence }
  0x1f   :  { %s81_s4 = sld [smem:[#allocation2 + $0x1]]  ;;  %v40_v0 = vld [vmem:[#allocation6] sm:$0xff]  ;;  %v41_v1 = vld [vmem:[#allocation6 + $0x8] sm:$0xff]  ;;  %s37_s5 = sld [smem:[#allocation2]] }
  0x20   :  { %v42_v2 = vand.u32 2147483647, %v40_v0  ;;  %v43_v3 = vand.u32 2147483647, %v41_v1  ;;  %s82_s6 = sld [smem:[#allocation2 + $0x2]]  ;;  %vm54_vm0 = vcmp.ge.f32.partialorder %v40_v0, 0.0 }
  0x21   :  { %s156_s1 = smov [#allocation7]   ;;  %vm55_vm1 = vcmp.ge.f32.partialorder %v41_v1, 0.0 }
  0x22   :  { %s68_s7 = sshll.u32 %s156_s1, 4  ;;  %s69_s7 = int_to_ptr.vmem [resolvable:$true] %s68_s7 }
  0x23   :  { %s124_s8 = scalar_lea.vmem %s69_s7, 256  ;;  %p129_p12 = scmp.lt.s32.totalorder %s69_s7, %s69_s7 }
  0x24   :  { %p125_p11 = scmp.ne.s32.totalorder %s69_s7, %s124_s8  ;;  %p130_p13 = scmp.lt.s32.totalorder %s124_s8, %s124_s8 }
  0x25   :  { %v44_v4 = vstv %s81_s4  ;;  %v51_v9 = vstv %s37_s5 }
  0x26   :  { %v45_v5 = vmul.f32 %v44_v4, %v42_v2  ;;  %v46_v6 = vmul.f32 %v44_v4, %v43_v3  ;;  %v56_v11 = vstv %s82_s6  ;;  %p131_p0 = por %p130_p13, %p129_p12 }
  0x28   :  { %v47_v7 = vmul.f32 1.442695, %v45_v5  ;;  %v49_v8 = vmul.f32 1.442695, %v46_v6  ;;  %p132_p1 = pnand %p131_p0, %p125_p11 }
  0x2a   :  { %88 = vpow2.f32 %v47_v7 }
  0x2b   :  { %90 = vpow2.f32 %v49_v8 }
  0x34   :  { %v89_v10 = vpop.eup %88 }
  0x35   :  { %v91_v12 = vpop.eup %90  ;;  %v52_v13 = vmul.f32 %v89_v10, %v51_v9 }
  0x36   :  { %v53_v14 = vmul.f32 %v91_v12, %v51_v9 }
  0x37   :  { %v57_v15 = vsub.f32 %v56_v11, %v52_v13 }
  0x38   :  { %v58_v16 = vsub.f32 %v56_v11, %v53_v14 }
  0x39   :  { %v59_v17 = vsel %vm54_vm0, %v52_v13, %v57_v15 }
  0x3a   :  { %61 = vst [vmem:[#allocation7] sm:$0xff] %v59_v17  ;;  %v60_v18 = vsel %vm55_vm1, %v53_v14, %v58_v16 }
  0x3b   :  { %62 = vst [vmem:[#allocation7 + $0x8] sm:$0xff] %v60_v18 }
  0x3c   :  { %135 = shalt.err (!%p132_p1)
}
  0x3d   :  { %s136_s11 = scalar_lea.hbm %s216_s2, 256 }
  0x3e   :  { %p137_p2 = scmp.ne.s32.totalorder %s216_s2, %s136_s11  ;;  %p140_p3 = scmp.lt.u32.totalorder %s136_s11, %s216_s2 }
  0x40   :  { %p142_p4 = pnand %p140_p3, %p137_p2 }
  0x42   :  { %145 = shalt.err (!%p142_p4)
}
  0x43   :  { %74 = dma.vmem_to_hbm [thread:$0]  %s69_s7, 256, %s216_s2, [#allocation4], %s154_s0, %s154_s0, %s155_s29  }
  0x44   :  { %150 = dma.done.wait [#allocation4], 256  }
  0x45   :  { %151 = vsyncadd [#allocation4], 4294967040 }
  0x46   :  { %78 = vsyncpa [#allocation3], 1 }
  0x47   :  { %79 = vsyncpa [#allocation4], 1 }
  0x48   :  { %80 = vsyncpa [#allocation5], 1 }

</bundles_post_ra>
